<compile_context>
chip_gen: v7x
topology: tpu7x:2x2x1
jax: 0.10.0
libtpu: 0.0.40
codegen_flags: <defaults>
</compile_context>

<pallas_src>
import jax
import jax.numpy as jnp
from jax import lax
from jax.experimental import pallas as pl
from jax.experimental.pallas import tpu as pltpu


# --------------------------- stage 1: grouped MoE ---------------------------
# grid = (n_token_tiles, n_hidden_tiles); hidden axis last (reduction into
# the f32 VMEM scratch).  Each token tile belongs to exactly one expert
# (groups are tile-aligned); meta_ref[ti] gives that expert's index and is
# consumed only by the weight index_maps (data-dependent block selection).
def _expert_kernel(meta_ref, x_ref, wt_ref, wa_ref, wg_ref, wdn_ref, o_ref,
                   acc_ref):
    hj = pl.program_id(1)

    @pl.when(hj == 0)
    def _init():
        acc_ref[...] = jnp.zeros_like(acc_ref)

    x = x_ref[...]                                                # (tm, D) bf16
    a = jnp.dot(x, wa_ref[...], preferred_element_type=jnp.float32)   # (tm, th)
    g = jnp.dot(x, wg_ref[...], preferred_element_type=jnp.float32)   # (tm, th)
    s = (a * (g * jax.nn.sigmoid(g))).astype(jnp.bfloat16)            # swiglu chunk
    acc_ref[...] += jnp.dot(s, wdn_ref[...],
                            preferred_element_type=jnp.float32)       # (tm, D)

    @pl.when(hj == pl.num_programs(1) - 1)
    def _finalize():
        # gate weight applied once per tile; residual skip is added on host
        # (sum_e gate_e == 1 for top-k softmax, so sum_e gate_e * x == x).
        o_ref[...] = (wt_ref[...] * acc_ref[...]).astype(o_ref.dtype)


# ----------------------- stage 2: shared vocab proj -------------------------
# grid = (V-tiles, token-tiles): token axis innermost so the w_proj tile stays
# resident across token tiles (fetched once per vocab tile).
def _proj_kernel(y_ref, w_ref, o_ref):
    o_ref[...] = jnp.dot(y_ref[...], w_ref[...],
                         preferred_element_type=jnp.float32).astype(o_ref.dtype)


# ------------------------------ host helpers --------------------------------
def _choose_tile(total, preferred, align):
    if total <= preferred:
        return total                      # full dim is always a legal block
    for cand in range(preferred, align - 1, -1):
        if total % cand == 0 and cand % align == 0:
            return cand
    return total


def _default_vmem_limit():
    # Budget ~3/4 of physical VMEM (128 MiB on v5e/v6e, 64 MiB on v7x).
    try:
        cap = pltpu.get_tpu_info().vmem_capacity_bytes
    except Exception:
        cap = 64 * 1024 * 1024
    return max(32 * 1024 * 1024, min(int(cap) * 3 // 4, 96 * 1024 * 1024))


def moe_head2_forward(x, params, *, n_experts, k, tm=512, th=512, tn=1024,
                      tm2=512):
    """MoEHead2.forward (eval routing branch).  x: (N, S, D) -> (N, S, V)."""
    N, S, D = x.shape
    T = N * S
    H = params["w_down"].shape[1]          # (E, H, D)
    V = params["w_proj"].shape[1]          # (D, V)
    vmem_limit = _default_vmem_limit()

    x2d_f32 = x.reshape(T, D).astype(jnp.float32)
    x2d_bf = x.reshape(T, D).astype(jnp.bfloat16)

    # ---- Router2 (eval path): scores -> top_k -> softmax gates (tiny XLA) ----
    scores = jnp.dot(x2d_f32, params["w_router"].T)                  # (T, E)
    c, ids = lax.top_k(scores, k)                                    # (T, k)
    cw = jax.nn.softmax(c, axis=-1)                                  # (T, k)

    # ---- grouped-GEMM host prep: sort routed copies by expert, pad groups ----
    Tk = T * k
    ids_flat = ids.reshape(Tk)
    cw_flat = cw.reshape(Tk)
    tok_flat = jnp.arange(Tk, dtype=jnp.int32) // k                  # token of copy

    sort_idx = jnp.argsort(ids_flat)
    ids_sorted = ids_flat[sort_idx]
    counts = jnp.bincount(ids_sorted, length=n_experts)              # (E,)

    tm = max(8, (min(tm, max(Tk, 8)) // 8) * 8)
    n_tiles = pl.cdiv(Tk, tm) + n_experts                            # static bound
    cap = n_tiles * tm

    gs_pad = tm * ((counts + tm - 1) // tm)                          # padded sizes
    ends_pad = jnp.cumsum(gs_pad)
    starts_pad = ends_pad - gs_pad
    starts_unpad = jnp.cumsum(counts) - counts

    ranks = jnp.arange(Tk, dtype=jnp.int32) - starts_unpad[ids_sorted]
    dest = (starts_pad[ids_sorted] + ranks).astype(jnp.int32)        # (Tk,)

    x_pad = jnp.zeros((cap, D), jnp.bfloat16).at[dest].set(
        x2d_bf[tok_flat[sort_idx]])
    wt_pad = jnp.zeros((cap, 1), jnp.float32).at[dest].set(
        cw_flat[sort_idx][:, None])

    # expert owning each token tile -> SMEM scalar prefetch (drives index_maps)
    tile_starts = jnp.arange(n_tiles, dtype=jnp.int32) * tm
    tile_expert = jnp.searchsorted(ends_pad, tile_starts, side="right")
    tile_expert = jnp.minimum(tile_expert, n_experts - 1).astype(jnp.int32)

    th = _choose_tile(H, th, 128)
    n_h = H // th

    # ---- stage 1: grouped up -> swiglu -> down, gate-weighted per tile ----
    flops1 = 6 * cap * D * H                      # 2*(a + g + down) matmul flops
    bytes1 = cap * D * 2 * 2 + cap * 4 + n_tiles * n_h * (3 * D * th * 2)
    y_pad = pl.pallas_call(
        _expert_kernel,
        grid_spec=pltpu.PrefetchScalarGridSpec(
            num_scalar_prefetch=1,
            grid=(n_tiles, n_h),
            in_specs=[
                pl.BlockSpec((tm, D), lambda ti, hj, m: (ti, 0)),        # tokens
                pl.BlockSpec((tm, 1), lambda ti, hj, m: (ti, 0)),        # gates
                pl.BlockSpec((None, D, th), lambda ti, hj, m: (m[ti], 0, hj)),
                pl.BlockSpec((None, D, th), lambda ti, hj, m: (m[ti], 0, hj)),
                pl.BlockSpec((None, th, D), lambda ti, hj, m: (m[ti], hj, 0)),
            ],
            out_specs=pl.BlockSpec((tm, D), lambda ti, hj, m: (ti, 0)),
            scratch_shapes=[pltpu.VMEM((tm, D), jnp.float32)],
        ),
        out_shape=jax.ShapeDtypeStruct((cap, D), jnp.bfloat16),
        compiler_params=pltpu.CompilerParams(
            dimension_semantics=("parallel", "arbitrary"),
            vmem_limit_bytes=vmem_limit),
        cost_estimate=pl.CostEstimate(flops=int(flops1),
                                      transcendentals=int(cap * H),
                                      bytes_accessed=int(bytes1)),
    )(tile_expert, x_pad, wt_pad,
      params["w_up_a"], params["w_up_g"], params["w_down"])

    # ---- unsort + sum over the k routed copies, residual added once ----
    pos = jnp.zeros((Tk,), jnp.int32).at[sort_idx].set(dest)
    y_routed = y_pad[pos].astype(jnp.float32).reshape(T, k, D)
    y_tok = (x2d_f32 + jnp.sum(y_routed, axis=1)).astype(jnp.bfloat16)

    # ---- stage 2: one shared vocab projection (proj weights tied per-expert) ----
    tm2 = _choose_tile(T, tm2, 8)
    tn = _choose_tile(V, tn, 128)
    n_t2, n_v = T // tm2, V // tn
    flops2 = 2 * T * D * V
    bytes2 = T * D * 2 + D * V * 2 + T * V * 2
    logits = pl.pallas_call(
        _proj_kernel,
        grid=(n_v, n_t2),
        in_specs=[pl.BlockSpec((tm2, D), lambda vi, ti: (ti, 0)),
                  pl.BlockSpec((D, tn), lambda vi, ti: (0, vi))],
        out_specs=pl.BlockSpec((tm2, tn), lambda vi, ti: (ti, vi)),
        out_shape=jax.ShapeDtypeStruct((T, V), jnp.bfloat16),
        compiler_params=pltpu.CompilerParams(
            dimension_semantics=("parallel", "parallel"),
            vmem_limit_bytes=vmem_limit),
        cost_estimate=pl.CostEstimate(flops=int(flops2), transcendentals=0,
                                      bytes_accessed=int(bytes2)),
    )(y_tok, params["w_proj"])

    return logits.reshape(N, S, V)


def init_params(key, dim, vocab_size, n_experts):
    """nn.Linear-style init, stored in MXU-native (K, N) layouts."""
    hidden = dim * 8 // 3
    ks = jax.random.split(key, 5)

    def lin(k, shape, fan_in):
        bound = 1.0 / (fan_in ** 0.5)
        return jax.random.uniform(k, shape, jnp.float32, -bound, bound)

    w_router = lin(ks[0], (n_experts, dim), dim)                 # Router2.linear
    # up-projection split into swiglu a/g halves so hidden can be tiled
    w_up_a = lin(ks[1], (n_experts, dim, hidden), dim)           # (E, D, H)
    w_up_g = lin(ks[2], (n_experts, dim, hidden), dim)           # (E, D, H)
    w_down = lin(ks[3], (n_experts, hidden, dim), hidden)        # (E, H, D)
    # MoEHead2.__init__ ties all experts' proj weights -> store once, (D, V).
    w_proj = lin(ks[4], (dim, vocab_size), dim)
    return dict(
        w_router=w_router,
        w_up_a=w_up_a.astype(jnp.bfloat16),
        w_up_g=w_up_g.astype(jnp.bfloat16),
        w_down=w_down.astype(jnp.bfloat16),
        w_proj=w_proj.astype(jnp.bfloat16),
    )


def _reference(x2d, params, n_experts, k):
    """Pure-JAX f32 reference of the MoEHead2 math (loose sanity check)."""
    scores = jnp.dot(x2d, params["w_router"].T)
    c, ids = lax.top_k(scores, k)
    cw = jax.nn.softmax(c, axis=-1)
    wa = params["w_up_a"].astype(jnp.float32)
    wg = params["w_up_g"].astype(jnp.float32)
    wdn = params["w_down"].astype(jnp.float32)
    wpj = params["w_proj"].astype(jnp.float32)
    out = jnp.zeros((x2d.shape[0], wpj.shape[1]), jnp.float32)
    for e in range(n_experts):
        a = x2d @ wa[e]
        g = x2d @ wg[e]
        y = (a * (g * jax.nn.sigmoid(g))) @ wdn[e] + x2d
        logits = y @ wpj
        wt = sum(jnp.where(ids[:, j] == e, cw[:, j], 0.0) for j in range(k))
        out = out + wt[:, None] * logits
    return out


if __name__ == "__main__":
    dim, vocab_size, n_experts, k = 48, 512, 4, 2   # hidden = dim*8//3 = 128
    N, S = 2, 64                                    # T = 128 tokens

    key = jax.random.PRNGKey(0)
    kx, kp = jax.random.split(key)
    x = jax.random.normal(kx, (N, S, dim), jnp.float32)
    params = init_params(kp, dim, vocab_size, n_experts)

    # small tiles so the toy run exercises the grouped-GEMM tiling, the
    # data-dependent weight index_map, and the vocab/token tiling of stage 2
    y = moe_head2_forward(x, params, n_experts=n_experts, k=k,
                          tm=64, th=128, tn=256, tm2=64)
    jax.block_until_ready(y)

    assert y.shape == (N, S, vocab_size), y.shape
    assert y.dtype == jnp.bfloat16, y.dtype

    # loose numerical sanity check vs f32 reference (kernel matmuls run in bf16
    # and logits are written back as bf16)
    ref = _reference(x.reshape(N * S, dim).astype(jnp.float32),
                     params, n_experts, k).reshape(N, S, vocab_size)
    err = float(jnp.max(jnp.abs(y.astype(jnp.float32) - ref)))
    scale = float(jnp.max(jnp.abs(ref))) + 1.0
    assert err < 0.05 * scale, (err, scale)

    print("KERNEL_OK")
</pallas_src>

<mosaic_0001>
module attributes {stable_mosaic.version = 11 : i64} {
  func.func @_expert_kernel(%arg0: i32, %arg1: i32, %arg2: memref<8xi32, #tpu.memory_space<smem>>, %arg3: memref<64x48xbf16, #tpu.memory_space<vmem>>, %arg4: memref<64x1xf32, #tpu.memory_space<vmem>>, %arg5: memref<1x48x128xbf16, #tpu.memory_space<vmem>>, %arg6: memref<1x48x128xbf16, #tpu.memory_space<vmem>>, %arg7: memref<1x128x48xbf16, #tpu.memory_space<vmem>>, %arg8: memref<64x48xbf16, #tpu.memory_space<vmem>>, %arg9: memref<64x48xf32, #tpu.memory_space<vmem>>) attributes {dimension_semantics = [#tpu.dimension_semantics<parallel>, #tpu.dimension_semantics<arbitrary>], iteration_bounds = array<i64: 8, 1>, scalar_prefetch = 1 : i64, scratch_operands = 1 : i64, tpu.core_type = #tpu.core_type<tc>, window_params = [{transform_indices = @transform_0, window_bounds = array<i64: 64, 48>}, {transform_indices = @transform_1, window_bounds = array<i64: 64, 1>}, {transform_indices = @transform_2, window_bounds = array<i64: 1, 48, 128>}, {transform_indices = @transform_3, window_bounds = array<i64: 1, 48, 128>}, {transform_indices = @transform_4, window_bounds = array<i64: 1, 128, 48>}, {transform_indices = @transform_5, window_bounds = array<i64: 64, 48>}]} {
    %c0_i32 = arith.constant 0 : i32
    %0 = arith.cmpi eq, %arg1, %c0_i32 : i32
    %1 = arith.extui %0 : i1 to i32
    %c0_i32_0 = arith.constant 0 : i32
    %2 = arith.cmpi ne, %1, %c0_i32_0 : i32
    scf.if %2 {
      %cst_20 = arith.constant 0.000000e+00 : f32
      %27 = vector.broadcast %cst_20 : f32 to vector<64x48xf32>
      %c0_21 = arith.constant 0 : index
      %c0_22 = arith.constant 0 : index
      %28 = vector.load %arg9[%c0_21, %c0_22] : memref<64x48xf32, #tpu.memory_space<vmem>>, vector<64x48xf32>
      tpu.vector_store %arg9[%c0_21, %c0_22], %27 {strides = array<i32>} : memref<64x48xf32, #tpu.memory_space<vmem>>, vector<64x48xf32>,
    } else {
    }
    %c0 = arith.constant 0 : index
    %c0_1 = arith.constant 0 : index
    %3 = vector.load %arg3[%c0, %c0_1] : memref<64x48xbf16, #tpu.memory_space<vmem>>, vector<64x48xbf16>
    %c0_2 = arith.constant 0 : index
    %c0_3 = arith.constant 0 : index
    %c0_4 = arith.constant 0 : index
    %4 = vector.load %arg5[%c0_2, %c0_3, %c0_4] : memref<1x48x128xbf16, #tpu.memory_space<vmem>>, vector<1x48x128xbf16>
    %5 = vector.shape_cast %4 : vector<1x48x128xbf16> to vector<48x128xbf16>
    %cst = arith.constant dense<0.000000e+00> : vector<64x128xf32>
    %6 = tpu.matmul %3, %5, %cst {dimension_numbers = #tpu.dot_dimension_numbers<[1], [0], [0], [1], [0, 0, 1, 1], [], []>} : vector<64x48xbf16>, vector<48x128xbf16>, vector<64x128xf32> -> vector<64x128xf32>
    %c0_5 = arith.constant 0 : index
    %c0_6 = arith.constant 0 : index
    %c0_7 = arith.constant 0 : index
    %7 = vector.load %arg6[%c0_5, %c0_6, %c0_7] : memref<1x48x128xbf16, #tpu.memory_space<vmem>>, vector<1x48x128xbf16>
    %8 = vector.shape_cast %7 : vector<1x48x128xbf16> to vector<48x128xbf16>
    %cst_8 = arith.constant dense<0.000000e+00> : vector<64x128xf32>
    %9 = tpu.matmul %3, %8, %cst_8 {dimension_numbers = #tpu.dot_dimension_numbers<[1], [0], [0], [1], [0, 0, 1, 1], [], []>} : vector<64x48xbf16>, vector<48x128xbf16>, vector<64x128xf32> -> vector<64x128xf32>
    %10 = arith.negf %9 : vector<64x128xf32>
    %11 = math.exp %10 : vector<64x128xf32>
    %cst_9 = arith.constant 1.000000e+00 : f32
    %12 = vector.broadcast %cst_9 : f32 to vector<64x128xf32>
    %13 = arith.addf %12, %11 : vector<64x128xf32>
    %14 = arith.divf %12, %13 : vector<64x128xf32>
    %15 = arith.mulf %9, %14 : vector<64x128xf32>
    %16 = arith.mulf %6, %15 : vector<64x128xf32>
    %17 = arith.truncf %16 : vector<64x128xf32> to vector<64x128xbf16>
    %c0_10 = arith.constant 0 : index
    %c0_11 = arith.constant 0 : index
    %18 = vector.load %arg9[%c0_10, %c0_11] : memref<64x48xf32, #tpu.memory_space<vmem>>, vector<64x48xf32>
    %c0_12 = arith.constant 0 : index
    %c0_13 = arith.constant 0 : index
    %c0_14 = arith.constant 0 : index
    %19 = vector.load %arg7[%c0_12, %c0_13, %c0_14] : memref<1x128x48xbf16, #tpu.memory_space<vmem>>, vector<1x128x48xbf16>
    %20 = vector.shape_cast %19 : vector<1x128x48xbf16> to vector<128x48xbf16>
    %cst_15 = arith.constant dense<0.000000e+00> : vector<64x48xf32>
    %21 = tpu.matmul %17, %20, %cst_15 {dimension_numbers = #tpu.dot_dimension_numbers<[1], [0], [0], [1], [0, 0, 1, 1], [], []>} : vector<64x128xbf16>, vector<128x48xbf16>, vector<64x48xf32> -> vector<64x48xf32>
    %22 = arith.addf %18, %21 : vector<64x48xf32>
    %c0_16 = arith.constant 0 : index
    %c0_17 = arith.constant 0 : index
    %23 = vector.load %arg9[%c0_16, %c0_17] : memref<64x48xf32, #tpu.memory_space<vmem>>, vector<64x48xf32>
    tpu.vector_store %arg9[%c0_16, %c0_17], %22 {strides = array<i32>} : memref<64x48xf32, #tpu.memory_space<vmem>>, vector<64x48xf32>,
    %c0_i32_18 = arith.constant 0 : i32
    %24 = arith.cmpi eq, %arg1, %c0_i32_18 : i32
    %25 = arith.extui %24 : i1 to i32
    %c0_i32_19 = arith.constant 0 : i32
    %26 = arith.cmpi ne, %25, %c0_i32_19 : i32
    scf.if %26 {
      %c0_20 = arith.constant 0 : index
      %c0_21 = arith.constant 0 : index
      %27 = vector.load %arg4[%c0_20, %c0_21] : memref<64x1xf32, #tpu.memory_space<vmem>>, vector<64x1xf32>
      %c0_22 = arith.constant 0 : index
      %c0_23 = arith.constant 0 : index
      %28 = vector.load %arg9[%c0_22, %c0_23] : memref<64x48xf32, #tpu.memory_space<vmem>>, vector<64x48xf32>
      %29 = vector.broadcast %27 : vector<64x1xf32> to vector<64x48xf32>
      %30 = arith.mulf %29, %28 : vector<64x48xf32>
      %31 = arith.truncf %30 : vector<64x48xf32> to vector<64x48xbf16>
      %c0_24 = arith.constant 0 : index
      %c0_25 = arith.constant 0 : index
      %32 = vector.load %arg8[%c0_24, %c0_25] : memref<64x48xbf16, #tpu.memory_space<vmem>>, vector<64x48xbf16>
      tpu.vector_store %arg8[%c0_24, %c0_25], %31 {strides = array<i32>} : memref<64x48xbf16, #tpu.memory_space<vmem>>, vector<64x48xbf16>,
    } else {
    }
    return
  }
  func.func @transform_0(%arg0: i32, %arg1: i32, %arg2: memref<8xi32, #tpu.memory_space<smem>>) -> (i32, i32) {
    %c0_i32 = arith.constant 0 : i32
    %c0_i32_0 = arith.constant 0 : i32
    return %arg0, %c0_i32 : i32, i32
  }
  func.func @transform_1(%arg0: i32, %arg1: i32, %arg2: memref<8xi32, #tpu.memory_space<smem>>) -> (i32, i32) {
    %c0_i32 = arith.constant 0 : i32
    %c0_i32_0 = arith.constant 0 : i32
    return %arg0, %c0_i32 : i32, i32
  }
  func.func @transform_2(%arg0: i32, %arg1: i32, %arg2: memref<8xi32, #tpu.memory_space<smem>>) -> (i32, i32, i32) {
    %0 = arith.index_cast %arg0 : i32 to index
    %1 = memref.load %arg2[%0] : memref<8xi32, #tpu.memory_space<smem>>
    %c0_i32 = arith.constant 0 : i32
    %c0_i32_0 = arith.constant 0 : i32
    return %1, %c0_i32, %arg1 : i32, i32, i32
  }
  func.func @transform_3(%arg0: i32, %arg1: i32, %arg2: memref<8xi32, #tpu.memory_space<smem>>) -> (i32, i32, i32) {
    %0 = arith.index_cast %arg0 : i32 to index
    %1 = memref.load %arg2[%0] : memref<8xi32, #tpu.memory_space<smem>>
    %c0_i32 = arith.constant 0 : i32
    %c0_i32_0 = arith.constant 0 : i32
    return %1, %c0_i32, %arg1 : i32, i32, i32
  }
  func.func @transform_4(%arg0: i32, %arg1: i32, %arg2: memref<8xi32, #tpu.memory_space<smem>>) -> (i32, i32, i32) {
    %0 = arith.index_cast %arg0 : i32 to index
    %1 = memref.load %arg2[%0] : memref<8xi32, #tpu.memory_space<smem>>
    %c0_i32 = arith.constant 0 : i32
    %c0_i32_0 = arith.constant 0 : i32
    return %1, %arg1, %c0_i32 : i32, i32, i32
  }
  func.func @transform_5(%arg0: i32, %arg1: i32, %arg2: memref<8xi32, #tpu.memory_space<smem>>) -> (i32, i32) {
    %c0_i32 = arith.constant 0 : i32
    %c0_i32_0 = arith.constant 0 : i32
    return %arg0, %c0_i32 : i32, i32
  }
}

</mosaic_0001>

<bundles_post_ra>
// kernel: tpu_custom_call.1
= control target key start
LH: loop header
LB: loop body
LE: loop exit
PB: predicated region body
PF: predicated region fallthrough
CT: control target
= control target key end

     0   :  { %s1515_s0 = inlined_call_operand.vmem [shape: s32[8], index: 0, kind: input, shape index: {}]   ;;  %s1516_s1 = inlined_call_operand.vmem [shape: bf16[512,48], index: 1, kind: input, shape index: {}]   ;;  %s1517_s2 = inlined_call_operand.vmem [shape: f32[512,1], index: 2, kind: input, shape index: {}]   ;;  %s1518_s3 = inlined_call_operand.vmem [shape: bf16[4,48,128], index: 3, kind: input, shape index: {}]   ;;  %s1519_s4 = inlined_call_operand.vmem [shape: bf16[4,48,128], index: 4, kind: input, shape index: {}]   ;;  %s1520_s5 = inlined_call_operand.vmem [shape: bf16[4,128,48], index: 5, kind: input, shape index: {}]   ;;  %s1521_s6 = inlined_call_operand.vmem [shape: bf16[512,48], index: 6, kind: output, shape index: {}]  }
   0x1   :  { %s11_s23 = sshll.u32 %s1515_s0, 4  ;;  %s12_s23 = int_to_ptr.vmem [resolvable:$true] %s11_s23 }
   0x2   :  { %s1308_s24 = scalar_lea.vmem %s12_s23, 16  ;;  %p1313_p1 = scmp.lt.s32.totalorder %s12_s23, %s12_s23 }
   0x3   :  { %p1309_p0 = scmp.ne.s32.totalorder %s12_s23, %s1308_s24  ;;  %p1314_p2 = scmp.lt.s32.totalorder %s1308_s24, %s1308_s24 }
   0x5   :  { %p1315_p3 = por %p1314_p2, %p1313_p1 }
   0x7   :  { %p1316_p4 = pnand %p1315_p3, %p1309_p0 }
   0x9   :  { %1319 = shalt.err (!%p1316_p4)  }
   0xa   :  { %s1346_s25 = smov [#allocation4]  }
   0xb   :  { %14 = dma.vmem_to_smem %s12_s23, 16, %s1346_s25, [#allocation3] }
   0xc   :  { %1332 = dma.done.wait [#allocation3], 16 }
   0xd   :  { %1333 = vsyncadd [#allocation3], 4294967280 }
   0xe   :  { %16 = sfence }
   0xf   :  { %s1387_s26 = smov 0   ;;  %s1389_s27 = smov 0  }
  0x10   :  { %s1391_s28 = smov 0  }
  0x11 LB: > { %s34_s0 = sadd.s32 1, %s1340_s27  ;;  %p1085_p5 = scmp.ge.s32.totalorder %s1344_s28, 1  ;;  %s1344_s28 = sphi %s1391_s28, %s22_s28   ;;  %s1340_s27 = sphi %s1389_s27, %s1523_s27   ;;  %s1336_s26 = sphi %s1387_s26, %s1522_s26  }
  0x12   : > { %p36_p6 = scmp.ge.s32.totalorder %s34_s0, 8  ;;  %p277_p7 = scmp.lt.s32.totalorder %s1344_s28, 9 }
  0x14   : > { %s1525_s0 = smov (%p36_p6, %s34_s0), 0  ;;  %p278_p8 = pnand %p1085_p5, %p277_p7 }
  0x15   : > { %s350_s29 = sld [smem:[#allocation4 + %s1336_s26]] (!%p278_p8)  ;;  %s1086_s30 = sshll.u32 (!%p278_p8), %s1336_s26, 3  ;;  %vm393_vm0 = vcmask (!%p278_p8), 392192   ;;  %v1347_v18 = vmov (!%p278_p8), 0   ;;  %v1348_v21 = vmov (!%p278_p8), 0.0   ;;  %vm941_vm1 = vcmask (!%p278_p8), 388096  }
  0x16   : > { %281 = sbr.rel (%p278_p8) target bundleno = 550 (0x226), region = 40  ;;  %p339_p9 = scmp.lt.s32.totalorder (!%p278_p8), %s1086_s30, 63  ;;  %1257 = vset.pattern.permute.xlu1 (!%p278_p8), %v1347_v18  ;;  %1256 = vset.pattern.permute.xlu0 (!%p278_p8), %v1347_v18  ;;  %396 = vst.msk [vmem:[#allocation2 + $0x10] sm:$0xff] (!%p278_p8), %vm393_vm0, %v1348_v21  ;;  %394 = vst.msk [vmem:[#allocation2] sm:$0xff] (!%p278_p8), %vm393_vm0, %v1348_v21 }
  0x17   : > { %s360_s7 = sld [smem:[#allocation4 + %s1336_s26]] (!%p278_p8)  ;;  %395 = vst.msk [vmem:[#allocation2 + $0x8] sm:$0xff] (!%p278_p8), %vm393_vm0, %v1348_v21  ;;  %397 = vst.msk [vmem:[#allocation2 + $0x18] sm:$0xff] (!%p278_p8), %vm393_vm0, %v1348_v21 }
  0x18   : > { %s370_s20 = sld [smem:[#allocation4 + %s1336_s26]] (!%p278_p8)  ;;  %398 = vst.msk [vmem:[#allocation2 + $0x20] sm:$0xff] (!%p278_p8), %vm393_vm0, %v1348_v21  ;;  %399 = vst.msk [vmem:[#allocation2 + $0x28] sm:$0xff] (!%p278_p8), %vm393_vm0, %v1348_v21 }
  0x19   : > { %400 = vst.msk [vmem:[#allocation2 + $0x30] sm:$0xff] (!%p278_p8), %vm393_vm0, %v1348_v21  ;;  %401 = vst.msk [vmem:[#allocation2 + $0x38] sm:$0xff] (!%p278_p8), %vm393_vm0, %v1348_v21 }
  0x1b   : > { %p351_p10 = scmp.lt.s32.totalorder (!%p278_p8), %s350_s29, 3 }
  0x1d   : > { %s1527_s30 = smov (!%p339_p9, %s1086_s30), 63  ;;  %p361_p11 = scmp.lt.s32.totalorder %s360_s7, 3 }
  0x1e   : > { %s1087_s8 = sshll.u32 %s1527_s30, 2  ;;  %s1529_s29 = smov (!%p351_p10, %s350_s29), 3 }
  0x1f   : > { %s1418_s11 = scalar_lea.vmem %s1516_s1, %s1087_s8  ;;  %s1531_s7 = smov (!%p361_p11, %s360_s7), 3 }
  0x20   : > { %v1261_v0 = vld [vmem:[%s1418_s11] sm:$0xff]   ;;  %s1227_s12 = smul.u32 24, %s1529_s29  ;;  %v1262_v5 = vld [vmem:[%s1418_s11 + $0x8] sm:$0xff]   ;;  %v1265_v6 = vld [vmem:[%s1418_s11 + $0x10] sm:$0xff]   ;;  %p372_p12 = scmp.lt.s32.totalorder %s370_s20, 3 }
  0x21   : > { %1181 = vmatprep.mubr.msk.bf16.mxu1 %vm393_vm0, %v1261_v0  ;;  %s1228_s13 = smul.u32 24, %s1531_s7  ;;  %v1266_v9 = vld [vmem:[%s1418_s11 + $0x18] sm:$0xff]   ;;  %s1089_s25 = sshll.u32 %s1527_s30, 3 }
  0x22   : > { %s358_s16 = scalar_lea.vmem %s1518_s3, %s1227_s12  ;;  %s1533_s20 = smov (!%p372_p12, %s370_s20), 3 }
  0x23   : > { %v1258_v1 = vld [vmem:[%s358_s16] sm:$0xff]   ;;  %v1259_v2 = vld [vmem:[%s358_s16 + $0x8] sm:$0xff]   ;;  %s368_s19 = scalar_lea.vmem %s1519_s4, %s1228_s13  ;;  %v1260_v3 = vld [vmem:[%s358_s16 + $0x10] sm:$0xff]   ;;  %s1140_s21 = sshll.u32 %s1533_s20, 6 }
  0x24   : > { %1175 = vmatprep.subr.bf16.mxu1 %v1258_v1  ;;  %v1263_v4 = vld [vmem:[%s368_s19] sm:$0xff]   ;;  %v1264_v7 = vld [vmem:[%s368_s19 + $0x8] sm:$0xff]   ;;  %v1267_v8 = vld [vmem:[%s368_s19 + $0x10] sm:$0xff]   ;;  %s379_s24 = scalar_lea.vmem %s1520_s5, %s1140_s21  ;;  %s348_s7 = scalar_lea.vmem %s1517_s2, %s1089_s25 }
  0x25   : > { %1176 = vmatpush3.bf16.msra.mxu1 %v1258_v1  ;;  %v1268_v10 = vld [vmem:[%s379_s24] sm:$0xff]   ;;  %v1269_v11 = vld [vmem:[%s379_s24 + $0x8] sm:$0xff]   ;;  %v1270_v12 = vld [vmem:[%s379_s24 + $0x10] sm:$0xff]   ;;  %s1485_s11 = scalar_lea.vmem %s1521_s6, %s1087_s8 }
  0x26   : > { %1177 = vmatprep.subr.bf16.mxu1 %v1259_v2  ;;  %1203 = vmatprep.subr.bf16.mxu0 %v1268_v10  ;;  %v1271_v13 = vld [vmem:[%s379_s24 + $0x18] sm:$0xff]   ;;  %v1272_v14 = vld [vmem:[%s379_s24 + $0x20] sm:$0xff]   ;;  %v1273_v15 = vld [vmem:[%s379_s24 + $0x28] sm:$0xff]  }
  0x27   : > { %1204 = vmatpush3.bf16.msra.mxu0 %v1268_v10  ;;  %v1274_v16 = vld [vmem:[%s379_s24 + $0x30] sm:$0xff]   ;;  %v1275_v17 = vld [vmem:[%s379_s24 + $0x38] sm:$0xff]   ;;  %v845_v20 = vld [vmem:[%s348_s7] sm:$0xff] }
  0x28   : > { %1205 = vmatprep.subr.bf16.mxu0 %v1269_v11  ;;  %v847_v19 = vld [vmem:[%s348_s7 + $0x10] sm:$0xff]  ;;  %863 = vperm.xlu0 %1256, %v845_v20   ;;  %v848_v22 = vld [vmem:[%s348_s7 + $0x18] sm:$0xff]  ;;  %v846_v23 = vld [vmem:[%s348_s7 + $0x8] sm:$0xff] }
  0x29   : > { %1178 = vmatpush3.bf16.msra.mxu1 %v1259_v2  ;;  %873 = vperm.xlu1 %1257, %v847_v19   ;;  %v850_v24 = vld [vmem:[%s348_s7 + $0x28] sm:$0xff]  ;;  %v849_v25 = vld [vmem:[%s348_s7 + $0x20] sm:$0xff]  ;;  %v852_v26 = vld [vmem:[%s348_s7 + $0x38] sm:$0xff] }
  0x2a   : > { %1179 = vmatprep.subr.bf16.mxu1 %v1260_v3  ;;  %v851_v27 = vld [vmem:[%s348_s7 + $0x30] sm:$0xff] }
  0x2b   : > { %1206 = vmatpush3.bf16.msra.mxu0 %v1269_v11 }
  0x2c   : > { %1207 = vmatprep.subr.bf16.mxu0 %v1270_v12  ;;  %868 = vperm.xlu0 %1256, %v846_v23  }
  0x2d   : > { %1180 = vmatpush3.bf16.msra.mxu1 %v1260_v3  ;;  %878 = vperm.xlu1 %1257, %v848_v22  }
  0x2e   : > { %1189 = vmatprep.subr.bf16.mxu1 %v1263_v4 }
  0x2f   : > { %1208 = vmatpush3.bf16.msra.mxu0 %v1270_v12 }
  0x30   : > { %1182 = vmatmul.mubr.msk.bf16.vlgmr.msra.gmra.mrb[0].mxu1 %vm393_vm0, %v1262_v5  ;;  %1209 = vmatprep.subr.bf16.mxu0 %v1271_v13 }
  0x31   : > { %1190 = vmatpush3.bf16.msra.mxu1 %v1263_v4  ;;  %1185 = vmatprep.mubr.msk.bf16.mxu1 %vm393_vm0, %v1265_v6 }
  0x32   : > { %1191 = vmatprep.subr.bf16.mxu1 %v1264_v7  ;;  %888 = vperm.xlu1 %1257, %v850_v24  }
  0x33   : > { %1210 = vmatpush3.bf16.msra.mxu0 %v1271_v13  ;;  %883 = vperm.xlu0 %1256, %v849_v25  }
  0x34   : > { %1211 = vmatprep.subr.bf16.mxu0 %v1272_v14 }
  0x35   : > { %1192 = vmatpush3.bf16.msra.mxu1 %v1264_v7 }
  0x36   : > { %1193 = vmatprep.subr.bf16.mxu1 %v1267_v8  ;;  %898 = vperm.xlu1 %1257, %v852_v26  }
  0x37   : > { %1212 = vmatpush3.bf16.msra.mxu0 %v1272_v14  ;;  %893 = vperm.xlu0 %1256, %v851_v27  }
  0x38   : > { %1186 = vmatmul.mubr.msk.bf16.gmra.mrb[4].mxu1 %vm393_vm0, %v1266_v9  ;;  %1213 = vmatprep.subr.bf16.mxu0 %v1273_v15 }
  0x39   : > { %1194 = vmatpush3.bf16.msra.mxu1 %v1267_v8  ;;  %1195 = vmatprep.mubr.msk.bf16.mxu1 %vm393_vm0, %v1261_v0 }
  0x3b   : > { %1214 = vmatpush3.bf16.msra.mxu0 %v1273_v15 }
  0x3c   : > { %1215 = vmatprep.subr.bf16.mxu0 %v1274_v16 }
  0x3f   : > { %1216 = vmatpush3.bf16.msra.mxu0 %v1274_v16 }
  0x40   : > { %1196 = vmatmul.mubr.msk.bf16.vlgmr.msra.gmra.mrb[8].mxu1 %vm393_vm0, %v1262_v5  ;;  %1217 = vmatprep.subr.bf16.mxu0 %v1275_v17 }
  0x41   : > { %1199 = vmatprep.mubr.msk.bf16.mxu1 %vm393_vm0, %v1265_v6 }
  0x43   : > { %1218 = vmatpush3.bf16.msra.mxu0 %v1275_v17 }
  0x48   : > { %1200 = vmatmul.mubr.msk.bf16.gmra.mrb[12].mxu1 %vm393_vm0, %v1266_v9 }
 0x103   : > { %v1183_v28 = vpop.f32.mrb[0].mxu1 }
 0x104   : > { %v1454_v29 = vpop.f32.mrb[1].mxu1 }
 0x105   : > { %v1456_v30 = vpop.f32.mrb[2].mxu1 }
 0x106   : > { %v1458_v31 = vpop.f32.mrb[3].mxu1 }
 0x10b   : > { %v1460_v32 = vpop.f32.mrb[4].mxu1 }
 0x10c   : > { %v1462_v33 = vpop.f32.mrb[5].mxu1 }
 0x10d   : > { %v1464_v34 = vpop.f32.mrb[6].mxu1 }
 0x10e   : > { %v1466_v35 = vpop.f32.mrb[7].mxu1 }
 0x113   : > { %v1197_v36 = vpop.f32.mrb[8].mxu1 }
 0x114   : > { %v1116_v37 = vmul.f32 -1.442695, %v1197_v36  ;;  %v590_v38 = vpop.f32.mrb[9].mxu1 }
 0x115   : > { %v1114_v39 = vmul.f32 -1.442695, %v590_v38  ;;  %v1198_v40 = vpop.f32.mrb[10].mxu1 }
 0x116   : > { %1276 = vpow2.f32 %v1116_v37  ;;  %v1117_v41 = vmul.f32 -1.442695, %v1198_v40  ;;  %v593_v42 = vpop.f32.mrb[11].mxu1  ;;  %v689_v37 = vld [vmem:[#allocation2] sm:$0xff] }
 0x117   : > { %1278 = vpow2.f32 %v1114_v39  ;;  %v1115_v43 = vmul.f32 -1.442695, %v593_v42 }
 0x118   : > { %1280 = vpow2.f32 %v1117_v41 }
 0x119   : > { %1282 = vpow2.f32 %v1115_v43  ;;  %v874_v43 = vpop.permute.xlu1 %873 }
 0x11b   : > { %v1201_v44 = vpop.f32.mrb[12].mxu1 }
 0x11c   : > { %v1120_v45 = vmul.f32 -1.442695, %v1201_v44  ;;  %v606_v46 = vpop.f32.mrb[13].mxu1 }
 0x11d   : > { %v1118_v47 = vmul.f32 -1.442695, %v606_v46  ;;  %v1202_v48 = vpop.f32.mrb[14].mxu1 }
 0x11e   : > { %1284 = vpow2.f32 %v1120_v45  ;;  %v1121_v49 = vmul.f32 -1.442695, %v1202_v48  ;;  %v609_v50 = vpop.f32.mrb[15].mxu1 }
 0x11f   : > { %1286 = vpow2.f32 %v1118_v47  ;;  %v1119_v51 = vmul.f32 -1.442695, %v609_v50  ;;  %v695_v47 = vld [vmem:[#allocation2 + $0x30] sm:$0xff] }
 0x120   : > { %v1277_v52 = vpop.eup %1276  ;;  %1288 = vpow2.f32 %v1121_v49  ;;  %v879_v49 = vpop.permute.xlu1 %878 }
 0x121   : > { %v1279_v53 = vpop.eup %1278  ;;  %v647_v54 = vadd.f32 1.0, %v1277_v52  ;;  %1290 = vpow2.f32 %v1119_v51  ;;  %v696_v51 = vld [vmem:[#allocation2 + $0x38] sm:$0xff] }
 0x122   : > { %v1281_v55 = vpop.eup %1280  ;;  %v645_v56 = vadd.f32 1.0, %v1279_v53 }
 0x123   : > { %v1283_v57 = vpop.eup %1282  ;;  %1292 = vrcp.f32 %v647_v54  ;;  %v648_v58 = vadd.f32 1.0, %v1281_v55  ;;  %v694_v54 = vld [vmem:[#allocation2 + $0x28] sm:$0xff] }
 0x124   : > { %1294 = vrcp.f32 %v645_v56  ;;  %v646_v59 = vadd.f32 1.0, %v1283_v57 }
 0x125   : > { %1296 = vrcp.f32 %v648_v58 }
 0x126   : > { %1298 = vrcp.f32 %v646_v59 }
 0x128   : > { %v1285_v60 = vpop.eup %1284 }
 0x129   : > { %v1287_v61 = vpop.eup %1286  ;;  %v651_v62 = vadd.f32 1.0, %v1285_v60 }
 0x12a   : > { %v1289_v63 = vpop.eup %1288  ;;  %v649_v0 = vadd.f32 1.0, %v1287_v61 }
 0x12b   : > { %v1291_v1 = vpop.eup %1290  ;;  %1300 = vrcp.f32 %v651_v62  ;;  %v652_v2 = vadd.f32 1.0, %v1289_v63 }
 0x12c   : > { %1302 = vrcp.f32 %v649_v0  ;;  %v650_v3 = vadd.f32 1.0, %v1291_v1 }
 0x12d   : > { %v1293_v4 = vpop.eup %1292  ;;  %1304 = vrcp.f32 %v652_v2 }
 0x12e   : > { %v1295_v5 = vpop.eup %1294  ;;  %v671_v6 = vmul.f32 %v1293_v4, %v1197_v36  ;;  %1306 = vrcp.f32 %v650_v3  ;;  %v691_v36 = vld [vmem:[#allocation2 + $0x10] sm:$0xff] }
 0x12f   : > { %v1297_v7 = vpop.eup %1296  ;;  %v669_v8 = vmul.f32 %v1295_v5, %v590_v38  ;;  %v864_v38 = vpop.permute.xlu0 %863 }
 0x130   : > { %v1299_v9 = vpop.eup %1298  ;;  %v679_v10 = vmul.f32 %v1183_v28, %v671_v6  ;;  %v672_v11 = vmul.f32 %v1297_v7, %v1198_v40  ;;  %v692_v40 = vld [vmem:[#allocation2 + $0x18] sm:$0xff]  ;;  %v889_v7 = vpop.permute.xlu1 %888 }
 0x131   : > { %v670_v12 = vmul.f32 %v1299_v9, %v593_v42  ;;  %v677_v13 = vmul.f32 %v669_v8, %v1454_v29  ;;  %v690_v42 = vld [vmem:[#allocation2 + $0x8] sm:$0xff] }
 0x132   : > { %v680_v14 = vmul.f32 %v1456_v30, %v672_v11 }
 0x133   : > { %v678_v15 = vmul.f32 %v670_v12, %v1458_v31 }
 0x134   : > { %v686_v16 = vpack.c.bf16 %v680_v14, %v679_v10 }
 0x135   : > { %v1301_v17 = vpop.eup %1300  ;;  %v685_v18 = vpack.c.bf16 %v678_v15, %v677_v13  ;;  %v899_v15 = vpop.permute.xlu1 %898 }
 0x136   : > { %v1303_v19 = vpop.eup %1302  ;;  %v675_v20 = vmul.f32 %v1301_v17, %v1201_v44 }
 0x137   : > { %v1305_v21 = vpop.eup %1304  ;;  %v673_v22 = vmul.f32 %v1303_v19, %v606_v46  ;;  %1219 = vmatprep.mubr.bf16.mxu0 %v685_v18  ;;  %v869_v46 = vpop.permute.xlu0 %868 }
 0x138   : > { %v1307_v23 = vpop.eup %1306  ;;  %v683_v24 = vmul.f32 %v1460_v32, %v675_v20  ;;  %v676_v25 = vmul.f32 %v1305_v21, %v1202_v48  ;;  %1220 = vmatmul.mubr.bf16.vlgmr.msra.gmra.mrb[0].mxu0 %v686_v16  ;;  %v693_v48 = vld [vmem:[#allocation2 + $0x20] sm:$0xff] }
 0x139   : > { %v681_v26 = vmul.f32 %v673_v22, %v1462_v33  ;;  %v674_v27 = vmul.f32 %v1307_v23, %v609_v50 }
 0x13a   : > { %v684_v28 = vmul.f32 %v1464_v34, %v676_v25 }
 0x13b   : > { %v682_v29 = vmul.f32 %v674_v27, %v1466_v35  ;;  %v884_v0 = vpop.permute.xlu0 %883 }
 0x13c   : > { %v688_v30 = vpack.c.bf16 %v684_v28, %v683_v24 }
 0x13d   : > { %v687_v31 = vpack.c.bf16 %v682_v29, %v681_v26 }
 0x13f   : > { %1223 = vmatprep.mubr.bf16.mxu0 %v687_v31  ;;  %v894_v10 = vpop.permute.xlu0 %893 }
 0x140   : > { %1224 = vmatmul.mubr.bf16.gmra.mrb[4].mxu0 %v688_v30 }
 0x20b   : > { %v1221_v39 = vpop.f32.mrb[0].mxu0 }
 0x20c   : > { %v828_v41 = vadd.f32 %v1221_v39, %v691_v36  ;;  %v795_v32 = vpop.f32.mrb[1].mxu0 }
 0x20d   : > { %v826_v44 = vadd.f32 %v795_v32, %v689_v37  ;;  %v1222_v33 = vpop.f32.mrb[2].mxu0 }
 0x20e   : > { %836 = vst.msk [vmem:[#allocation2 + $0x10] sm:$0xff] %vm393_vm0, %v828_v41  ;;  %v829_v34 = vadd.f32 %v1222_v33, %v692_v40  ;;  %v798_v45 = vpop.f32.mrb[3].mxu0 }
 0x20f   : > { %834 = vst.msk [vmem:[#allocation2] sm:$0xff] %vm393_vm0, %v826_v44  ;;  %v827_v35 = vadd.f32 %v798_v45, %v690_v42 }
 0x210   : > { %837 = vst.msk [vmem:[#allocation2 + $0x18] sm:$0xff] %vm393_vm0, %v829_v34 }
 0x211   : > { %835 = vst.msk [vmem:[#allocation2 + $0x8] sm:$0xff] %vm393_vm0, %v827_v35 }
 0x213   : > { %v1225_v50 = vpop.f32.mrb[4].mxu0 }
 0x214   : > { %v832_v52 = vadd.f32 %v1225_v50, %v695_v47  ;;  %v811_v53 = vpop.f32.mrb[5].mxu0 }
 0x215   : > { %v855_v55 = vld [vmem:[#allocation2 + $0x10] sm:$0xff]  ;;  %v830_v56 = vadd.f32 %v811_v53, %v693_v48  ;;  %v1226_v57 = vpop.f32.mrb[6].mxu0 }
 0x216   : > { %v903_v58 = vmul.f32 %v874_v43, %v855_v55  ;;  %v853_v59 = vld [vmem:[#allocation2] sm:$0xff]  ;;  %840 = vst.msk [vmem:[#allocation2 + $0x30] sm:$0xff] %vm393_vm0, %v832_v52  ;;  %v833_v60 = vadd.f32 %v1226_v57, %v696_v51  ;;  %v814_v61 = vpop.f32.mrb[7].mxu0 }
 0x217   : > { %v901_v62 = vmul.f32 %v864_v38, %v853_v59  ;;  %v856_v63 = vld [vmem:[#allocation2 + $0x18] sm:$0xff]  ;;  %838 = vst.msk [vmem:[#allocation2 + $0x20] sm:$0xff] %vm393_vm0, %v830_v56  ;;  %v831_v1 = vadd.f32 %v814_v61, %v694_v54 }
 0x218   : > { %v1143_v2 = vpack.c.bf16 %v903_v58, %v903_v58  ;;  %v904_v3 = vmul.f32 %v879_v49, %v856_v63  ;;  %v854_v4 = vld [vmem:[#allocation2 + $0x8] sm:$0xff]  ;;  %841 = vst.msk [vmem:[#allocation2 + $0x38] sm:$0xff] %vm393_vm0, %v833_v60 }
 0x219   : > { %v1141_v5 = vpack.c.bf16 %v901_v62, %v901_v62  ;;  %v902_v6 = vmul.f32 %v869_v46, %v854_v4  ;;  %839 = vst.msk [vmem:[#allocation2 + $0x28] sm:$0xff] %vm393_vm0, %v831_v1 }
 0x21a   : > { %v1144_v8 = vpack.c.bf16 %v904_v3, %v904_v3  ;;  %944 = vst.msk [vmem:[%s1485_s11 + $0x8] sm:$0xf] %vm941_vm1, %v1143_v2 }
 0x21b   : > { %v1142_v9 = vpack.c.bf16 %v902_v6, %v902_v6  ;;  %942 = vst.msk [vmem:[%s1485_s11] sm:$0xf] %vm941_vm1, %v1141_v5 }
 0x21c   : > { %945 = vst.msk [vmem:[%s1485_s11 + $0xc] sm:$0xf] %vm941_vm1, %v1144_v8 }
 0x21d   : > { %v859_v11 = vld [vmem:[#allocation2 + $0x30] sm:$0xff]  ;;  %943 = vst.msk [vmem:[%s1485_s11 + $0x4] sm:$0xf] %vm941_vm1, %v1142_v9 }
 0x21e   : > { %v857_v12 = vld [vmem:[#allocation2 + $0x20] sm:$0xff]  ;;  %v907_v13 = vmul.f32 %v894_v10, %v859_v11 }
 0x21f   : > { %v905_v14 = vmul.f32 %v884_v0, %v857_v12  ;;  %v860_v16 = vld [vmem:[#allocation2 + $0x38] sm:$0xff] }
 0x220   : > { %v1147_v17 = vpack.c.bf16 %v907_v13, %v907_v13  ;;  %v908_v18 = vmul.f32 %v899_v15, %v860_v16  ;;  %v858_v19 = vld [vmem:[#allocation2 + $0x28] sm:$0xff] }
 0x221   : > { %v1145_v20 = vpack.c.bf16 %v905_v14, %v905_v14  ;;  %v906_v21 = vmul.f32 %v889_v7, %v858_v19 }
 0x222   : > { %948 = vst.msk [vmem:[%s1485_s11 + $0x18] sm:$0xf] %vm941_vm1, %v1147_v17  ;;  %v1148_v22 = vpack.c.bf16 %v908_v18, %v908_v18 }
 0x223   : > { %946 = vst.msk [vmem:[%s1485_s11 + $0x10] sm:$0xf] %vm941_vm1, %v1145_v20  ;;  %v1146_v23 = vpack.c.bf16 %v906_v21, %v906_v21 }
 0x224   : > { %949 = vst.msk [vmem:[%s1485_s11 + $0x1c] sm:$0xf] %vm941_vm1, %v1148_v22 }
 0x225   : > { %947 = vst.msk [vmem:[%s1485_s11 + $0x14] sm:$0xf] %vm941_vm1, %v1146_v23 }
 0x226 PF: > { %s22_s28 = sadd.s32 1, %s1344_s28   ;;  %s1522_s26 = smov %s1340_s27 }
 0x227   : > { %p19_p13 = scmp.ge.s32.totalorder %s22_s28, 10   ;;  %s1523_s27 = smov %s1525_s0 }
 0x229   :  { %21 = sbr.rel (!%p19_p13) target bundleno = 17 (0x11), region = 90 }

</bundles_post_ra>
